<compile_context>
chip_gen: v7x
topology: tpu7x:2x2x1
jax: 0.10.0
libtpu: 0.0.40
codegen_flags: <defaults>
</compile_context>

<pallas_src>
import functools
import math

import jax
import jax.numpy as jnp
import numpy as np
from jax.experimental import pallas as pl
from jax.experimental.pallas import tpu as pltpu

_LANE = 128
_SUBLANE = 8
# Per-buffer tile cap.  With default double-buffering (2 in + 2 out buffers)
# peak VMEM use is ~4x this (= 32 MiB), which fits v7x's 64 MiB physical VMEM
# with headroom and is far below v5e/v6e's 128 MiB.
_MAX_BLOCK_BYTES = 8 * 1024 * 1024
_VMEM_LIMIT_BYTES = 48 * 1024 * 1024


def _copy_kernel(x_ref, o_ref):
    # Pass-through: the abstract Encoder defines no transformation.
    o_ref[...] = x_ref[...]


def _lane_dense_cols(n):
    """Largest convenient multiple of 128 lanes that divides n (0 if none)."""
    for cand in (1024, 512, 256, 128):
        if n % cand == 0:
            return cand
    return 0


@functools.partial(jax.jit, donate_argnums=0)
def encoder_forward(x):
    """Pallas 'forward' for the abstract Encoder: identity over X."""
    orig_shape = x.shape
    n = math.prod(orig_shape)
    itemsize = jnp.dtype(x.dtype).itemsize
    cols = _lane_dense_cols(n)

    if cols == 0:
        # Ragged element count (not a multiple of 128): single whole-array
        # block copy in the original layout.  Only hit for odd shapes.
        return pl.pallas_call(
            _copy_kernel,
            out_shape=jax.ShapeDtypeStruct(orig_shape, x.dtype),
            input_output_aliases={0: 0},
        )(x)

    rows = n // cols
    x2d = x.reshape(rows, cols)

    # Largest row block (multiple of the 8-row sublane tile) under the cap.
    block_rows = min(rows, max(_SUBLANE, _MAX_BLOCK_BYTES // (cols * itemsize)))
    if block_rows != rows:
        block_rows = max(_SUBLANE, (block_rows // _SUBLANE) * _SUBLANE)
    grid = (pl.cdiv(rows, block_rows),)

    out2d = pl.pallas_call(
        _copy_kernel,
        out_shape=jax.ShapeDtypeStruct((rows, cols), x.dtype),
        grid=grid,
        in_specs=[pl.BlockSpec((block_rows, cols), lambda i: (i, 0))],
        out_specs=pl.BlockSpec((block_rows, cols), lambda i: (i, 0)),
        input_output_aliases={0: 0},
        compiler_params=pltpu.CompilerParams(
            dimension_semantics=("parallel",),
            vmem_limit_bytes=_VMEM_LIMIT_BYTES,
        ),
    )(x2d)
    return out2d.reshape(orig_shape)


if __name__ == "__main__":
    key = jax.random.PRNGKey(0)
    B, S, H = 2, 8, 32  # batch, sequence length, hidden size
    x = jax.random.normal(key, (B, S, H), dtype=jnp.float32)

    # The input buffer is donated (output aliases it); keep a host copy for
    # the correctness check and never touch `x` after the call.
    x_host = np.asarray(x)

    out = encoder_forward(x)
    out = jax.block_until_ready(out)

    assert out.shape == (B, S, H)
    assert out.dtype == jnp.float32
    assert np.allclose(np.asarray(out), x_host)

    print("KERNEL_OK")
</pallas_src>

<mosaic_0001>
module attributes {stable_mosaic.version = 11 : i64} {
  func.func @_copy_kernel(%arg0: i32, %arg1: memref<1x512xf32, #tpu.memory_space<vmem>>, %arg2: memref<1x512xf32, #tpu.memory_space<vmem>>) attributes {dimension_semantics = [#tpu.dimension_semantics<parallel>], iteration_bounds = array<i64: 1>, scalar_prefetch = 0 : i64, scratch_operands = 0 : i64, tpu.core_type = #tpu.core_type<tc>, window_params = [{transform_indices = @transform_0, window_bounds = array<i64: 1, 512>}, {transform_indices = @transform_1, window_bounds = array<i64: 1, 512>}]} {
    %c0 = arith.constant 0 : index
    %c0_0 = arith.constant 0 : index
    %0 = vector.load %arg1[%c0, %c0_0] : memref<1x512xf32, #tpu.memory_space<vmem>>, vector<1x512xf32>
    %c0_1 = arith.constant 0 : index
    %c0_2 = arith.constant 0 : index
    %1 = vector.load %arg2[%c0_1, %c0_2] : memref<1x512xf32, #tpu.memory_space<vmem>>, vector<1x512xf32>
    tpu.vector_store %arg2[%c0_1, %c0_2], %0 {strides = array<i32>} : memref<1x512xf32, #tpu.memory_space<vmem>>, vector<1x512xf32>,
    return
  }
  func.func @transform_0(%arg0: i32) -> (i32, i32) {
    %c0_i32 = arith.constant 0 : i32
    %c0_i32_0 = arith.constant 0 : i32
    return %arg0, %c0_i32 : i32, i32
  }
  func.func @transform_1(%arg0: i32) -> (i32, i32) {
    %c0_i32 = arith.constant 0 : i32
    %c0_i32_0 = arith.constant 0 : i32
    return %arg0, %c0_i32 : i32, i32
  }
}

</mosaic_0001>

<bundles_post_ra>
// kernel: encoder_forward.1
= control target key start
LH: loop header
LB: loop body
LE: loop exit
PB: predicated region body
PF: predicated region fallthrough
CT: control target
= control target key end

     0   :  { %v9_v0 = vlaneseq  ;;  %s34_s0 = inlined_call_operand.vmem [shape: f32[1,512], index: 0, kind: input, shape index: {}, may-alias: {0,1}]   ;;  %s35_s1 = inlined_call_operand.vmem [shape: f32[1,512], index: 1, kind: output, shape index: {}, may-alias: {0,1}]  }
   0x1   :  { %v8_v1 = vld [vmem:[%s34_s0] sm:$0xf] }
   0x2   :  { %vm11_vm0 = vcmp.lt.s32.totalorder %v9_v0, 512 }
   0x3   :  { %13 = vst.msk [vmem:[%s35_s1] sm:$0xf] %vm11_vm0, %v8_v1 }

</bundles_post_ra>
